<compile_context>
chip_gen: v7x
topology: tpu7x:2x2x1
jax: 0.10.0
libtpu: 0.0.40
codegen_flags: <defaults>
</compile_context>

<pallas_src>
import math

import jax
import jax.numpy as jnp
from jax.experimental import pallas as pl
from jax.experimental.pallas import tpu as pltpu


# ---------------------------------------------------------------------------
# Kernel
# ---------------------------------------------------------------------------
def _ensemble_mlp_kernel(x_ref, w1_ref, w23_ref, b_ref, o_ref):
    """Fused EnsembleMLP forward on one batch tile.

    x_ref  : (TB, d_in)  batch tile of the shared input
    w1_ref : (d_in, W)   layer-1 weights of all members, e-major concat, zero-padded
    w23_ref: (2, W, W)   [0] = block-diag layer-2 weights, [1] = block-diag layer-3
    b_ref  : (3, W)      rows = layer-1 / layer-2 / layer-3 biases (e-major, padded)
    o_ref  : (TB, W)     lane-packed output; member e occupies lanes [e*d_out,(e+1)*d_out)
    """
    h = jnp.dot(x_ref[...], w1_ref[...], preferred_element_type=jnp.float32)
    h = jnp.maximum(h + b_ref[0:1, :], 0.0)                 # ReLU
    h = jnp.dot(h, w23_ref[0], preferred_element_type=jnp.float32)
    h = jnp.maximum(h + b_ref[1:2, :], 0.0)                 # ReLU
    o = jnp.dot(h, w23_ref[1], preferred_element_type=jnp.float32) + b_ref[2:3, :]
    o_ref[...] = o.astype(o_ref.dtype)


# ---------------------------------------------------------------------------
# One-time parameter preparation (hoisted out of the forward pass)
# ---------------------------------------------------------------------------
def _round_up(v, m):
    return ((v + m - 1) // m) * m


def _block_diag(mats, rows_pad, cols_pad, dtype):
    """Block-diagonal slab zero-padded to (rows_pad, cols_pad)."""
    r, c = mats[0].shape
    out = jnp.zeros((rows_pad, cols_pad), dtype)
    for e, m in enumerate(mats):               # tiny, init-time only
        out = out.at[e * r:(e + 1) * r, e * c:(e + 1) * c].set(m)
    return out


def prepare_ensemble_mlp_params(params):
    """Fuse/pad the raw LinearEnsemble params into lane-dense kernel slabs.

    Do this ONCE (params are static); the per-call forward only consumes the slabs.
    """
    w1, b1, w2, b2, w3, b3 = params
    E, d_in, h1 = w1.shape
    _, _, h2 = w2.shape
    _, _, d_out = w3.shape
    dtype = w1.dtype

    # Common lane-dense width for all fused layers (>= 128, multiple of 128).
    W = _round_up(max(E * h1, E * h2, E * d_out, 128), 128)

    # Layer 1: (E, d_in, h1) -> (d_in, E*h1) e-major concat, padded to W lanes.
    w1_cat = jnp.transpose(w1, (1, 0, 2)).reshape(d_in, E * h1)
    w1_slab = jnp.zeros((d_in, W), dtype).at[:, :E * h1].set(w1_cat)

    # Layers 2 & 3: block-diagonal slabs, padded to (W, W), stacked into one operand.
    w2_slab = _block_diag([w2[e] for e in range(E)], W, W, dtype)
    w3_slab = _block_diag([w3[e] for e in range(E)], W, W, dtype)
    w23_slab = jnp.stack([w2_slab, w3_slab], axis=0)          # (2, W, W)

    # Biases: one (3, W) slab, e-major per row, zero-padded.
    b_slab = jnp.zeros((3, W), dtype)
    b_slab = b_slab.at[0, :E * h1].set(b1.reshape(E * h1))
    b_slab = b_slab.at[1, :E * h2].set(b2.reshape(E * h2))
    b_slab = b_slab.at[2, :E * d_out].set(b3.reshape(E * d_out))

    meta = dict(E=E, d_in=d_in, h1=h1, h2=h2, d_out=d_out, W=W)
    return (w1_slab, w23_slab, b_slab, meta)


# ---------------------------------------------------------------------------
# Forward pass (per-call: kernel + layout plumbing only)
# ---------------------------------------------------------------------------
def ensemble_mlp_forward(x, prepped, *, batch_tile=512):
    """Forward pass of EnsembleMLP with act=ReLU, dropout=0.0, normalization=None,
    output_act=None.  x: (..., input_dim) -> (E, *batch_dims, output_dim)."""
    w1_slab, w23_slab, b_slab, meta = prepped
    E, d_in, h1, h2, d_out, W = (meta["E"], meta["d_in"], meta["h1"],
                                 meta["h2"], meta["d_out"], meta["W"])

    assert x.shape[-1] == d_in
    batch_dims = x.shape[:-1]
    x2d = x.reshape(-1, d_in)
    B = x2d.shape[0]

    # Batch tile: full array if small (no (8,128) constraint for full-extent blocks),
    # otherwise a sublane-aligned streaming tile.
    TB = B if B <= batch_tile else batch_tile
    grid = (pl.cdiv(B, TB),)

    flops = 2 * B * (d_in * W + 2 * W * W)
    bytes_accessed = 4 * (B * d_in + d_in * W + 2 * W * W + 3 * W + B * W)

    out_slab = pl.pallas_call(
        _ensemble_mlp_kernel,
        out_shape=jax.ShapeDtypeStruct((B, W), x2d.dtype),
        grid=grid,
        in_specs=[
            pl.BlockSpec((TB, d_in), lambda i: (i, 0)),       # streamed per tile
            pl.BlockSpec((d_in, W), lambda i: (0, 0)),        # VMEM-resident weights
            pl.BlockSpec((2, W, W), lambda i: (0, 0, 0)),
            pl.BlockSpec((3, W), lambda i: (0, 0)),
        ],
        out_specs=pl.BlockSpec((TB, W), lambda i: (i, 0)),
        compiler_params=pltpu.CompilerParams(
            dimension_semantics=("parallel",)),
        cost_estimate=pl.CostEstimate(flops=flops, transcendentals=0,
                                      bytes_accessed=bytes_accessed),
    )(x2d, w1_slab, w23_slab, b_slab)

    # Lane-unpack: member e occupies lanes [e*d_out, (e+1)*d_out).
    out = out_slab[:, :E * d_out].reshape(B, E, d_out).transpose(1, 0, 2)

    if len(batch_dims) > 1:
        out = out.reshape((E, *batch_dims, d_out))
    return out


# ---------------------------------------------------------------------------
# Init + reference
# ---------------------------------------------------------------------------
def init_ensemble_mlp_params(key, input_dim, hidden_layers, output_dim, ensemble_size):
    """Matches LinearEnsemble.reset_parameters: U(-1/sqrt(in), 1/sqrt(in))."""
    dims = [input_dim, *hidden_layers, output_dim]
    params = []
    for i in range(len(dims) - 1):
        d_in, d_out = dims[i], dims[i + 1]
        std = 1.0 / math.sqrt(d_in)
        key, kw, kb = jax.random.split(key, 3)
        w = jax.random.uniform(kw, (ensemble_size, d_in, d_out),
                               minval=-std, maxval=std, dtype=jnp.float32)
        b = jax.random.uniform(kb, (ensemble_size, 1, d_out),
                               minval=-std, maxval=std, dtype=jnp.float32)
        params.extend([w, b])
    return tuple(params)


def _reference_forward(x, params):
    """Pure-JAX reference (mirrors the torch.baddbmm + ReLU stack)."""
    w1, b1, w2, b2, w3, b3 = params
    E = w1.shape[0]
    xr = jnp.broadcast_to(x[None], (E, *x.shape))
    h = jnp.einsum("ebi,eio->ebo", xr, w1) + b1
    h = jnp.maximum(h, 0.0)
    h = jnp.einsum("ebi,eio->ebo", h, w2) + b2
    h = jnp.maximum(h, 0.0)
    return jnp.einsum("ebi,eio->ebo", h, w3) + b3


if __name__ == "__main__":
    key = jax.random.PRNGKey(0)

    ensemble_size = 3
    input_dim = 16
    hidden_layers = (32, 32)
    output_dim = 8
    batch = 8

    kx, kp = jax.random.split(key)
    x = jax.random.normal(kx, (batch, input_dim), dtype=jnp.float32)
    params = init_ensemble_mlp_params(kp, input_dim, hidden_layers, output_dim,
                                      ensemble_size)

    # One-time param prep (static weights), then the cheap per-call forward.
    prepped = jax.block_until_ready(prepare_ensemble_mlp_params(params))

    out = ensemble_mlp_forward(x, prepped)
    out = jax.block_until_ready(out)

    assert out.shape == (ensemble_size, batch, output_dim), out.shape

    ref = _reference_forward(x, params)
    assert jnp.allclose(out, ref, atol=1e-5, rtol=1e-5), \
        float(jnp.max(jnp.abs(out - ref)))

    print("KERNEL_OK")
</pallas_src>

<mosaic_0001>
module attributes {stable_mosaic.version = 11 : i64} {
  func.func @_ensemble_mlp_kernel(%arg0: i32, %arg1: memref<8x16xf32, #tpu.memory_space<vmem>>, %arg2: memref<16x128xf32, #tpu.memory_space<vmem>>, %arg3: memref<2x128x128xf32, #tpu.memory_space<vmem>>, %arg4: memref<3x128xf32, #tpu.memory_space<vmem>>, %arg5: memref<8x128xf32, #tpu.memory_space<vmem>>) attributes {dimension_semantics = [#tpu.dimension_semantics<parallel>], iteration_bounds = array<i64: 1>, scalar_prefetch = 0 : i64, scratch_operands = 0 : i64, tpu.core_type = #tpu.core_type<tc>, window_params = [{transform_indices = @transform_0, window_bounds = array<i64: 8, 16>}, {pipeline_mode = #tpu.pipeline_mode<synchronous>, transform_indices = @transform_1, window_bounds = array<i64: 16, 128>}, {pipeline_mode = #tpu.pipeline_mode<synchronous>, transform_indices = @transform_2, window_bounds = array<i64: 2, 128, 128>}, {pipeline_mode = #tpu.pipeline_mode<synchronous>, transform_indices = @transform_3, window_bounds = array<i64: 3, 128>}, {transform_indices = @transform_4, window_bounds = array<i64: 8, 128>}]} {
    %c0 = arith.constant 0 : index
    %c0_0 = arith.constant 0 : index
    %0 = vector.load %arg1[%c0, %c0_0] : memref<8x16xf32, #tpu.memory_space<vmem>>, vector<8x16xf32>
    %c0_1 = arith.constant 0 : index
    %c0_2 = arith.constant 0 : index
    %1 = vector.load %arg2[%c0_1, %c0_2] : memref<16x128xf32, #tpu.memory_space<vmem>>, vector<16x128xf32>
    %cst = arith.constant dense<0.000000e+00> : vector<8x128xf32>
    %2 = tpu.matmul %0, %1, %cst {dimension_numbers = #tpu.dot_dimension_numbers<[1], [0], [0], [1], [0, 0, 1, 1], [], []>} : vector<8x16xf32>, vector<16x128xf32>, vector<8x128xf32> -> vector<8x128xf32>
    %c0_3 = arith.constant 0 : index
    %c0_4 = arith.constant 0 : index
    %3 = vector.load %arg4[%c0_3, %c0_4] : memref<3x128xf32, #tpu.memory_space<vmem>>, vector<1x128xf32>
    %4 = vector.broadcast %3 : vector<1x128xf32> to vector<8x128xf32>
    %5 = arith.addf %2, %4 : vector<8x128xf32>
    %cst_5 = arith.constant 0.000000e+00 : f32
    %6 = vector.broadcast %cst_5 : f32 to vector<8x128xf32>
    %7 = arith.maximumf %5, %6 : vector<8x128xf32>
    %c0_6 = arith.constant 0 : index
    %c0_7 = arith.constant 0 : index
    %c0_8 = arith.constant 0 : index
    %8 = vector.load %arg3[%c0_6, %c0_7, %c0_8] : memref<2x128x128xf32, #tpu.memory_space<vmem>>, vector<1x128x128xf32>
    %9 = vector.shape_cast %8 : vector<1x128x128xf32> to vector<128x128xf32>
    %cst_9 = arith.constant dense<0.000000e+00> : vector<8x128xf32>
    %10 = tpu.matmul %7, %9, %cst_9 {dimension_numbers = #tpu.dot_dimension_numbers<[1], [0], [0], [1], [0, 0, 1, 1], [], []>} : vector<8x128xf32>, vector<128x128xf32>, vector<8x128xf32> -> vector<8x128xf32>
    %c1 = arith.constant 1 : index
    %c0_10 = arith.constant 0 : index
    %11 = vector.load %arg4[%c1, %c0_10] : memref<3x128xf32, #tpu.memory_space<vmem>>, vector<1x128xf32>
    %12 = vector.broadcast %11 : vector<1x128xf32> to vector<8x128xf32>
    %13 = arith.addf %10, %12 : vector<8x128xf32>
    %cst_11 = arith.constant 0.000000e+00 : f32
    %14 = vector.broadcast %cst_11 : f32 to vector<8x128xf32>
    %15 = arith.maximumf %13, %14 : vector<8x128xf32>
    %c1_12 = arith.constant 1 : index
    %c0_13 = arith.constant 0 : index
    %c0_14 = arith.constant 0 : index
    %16 = vector.load %arg3[%c1_12, %c0_13, %c0_14] : memref<2x128x128xf32, #tpu.memory_space<vmem>>, vector<1x128x128xf32>
    %17 = vector.shape_cast %16 : vector<1x128x128xf32> to vector<128x128xf32>
    %cst_15 = arith.constant dense<0.000000e+00> : vector<8x128xf32>
    %18 = tpu.matmul %15, %17, %cst_15 {dimension_numbers = #tpu.dot_dimension_numbers<[1], [0], [0], [1], [0, 0, 1, 1], [], []>} : vector<8x128xf32>, vector<128x128xf32>, vector<8x128xf32> -> vector<8x128xf32>
    %c2 = arith.constant 2 : index
    %c0_16 = arith.constant 0 : index
    %19 = vector.load %arg4[%c2, %c0_16] : memref<3x128xf32, #tpu.memory_space<vmem>>, vector<1x128xf32>
    %20 = vector.broadcast %19 : vector<1x128xf32> to vector<8x128xf32>
    %21 = arith.addf %18, %20 : vector<8x128xf32>
    %c0_17 = arith.constant 0 : index
    %c0_18 = arith.constant 0 : index
    %22 = vector.load %arg5[%c0_17, %c0_18] : memref<8x128xf32, #tpu.memory_space<vmem>>, vector<8x128xf32>
    tpu.vector_store %arg5[%c0_17, %c0_18], %21 {strides = array<i32>} : memref<8x128xf32, #tpu.memory_space<vmem>>, vector<8x128xf32>,
    return
  }
  func.func @transform_0(%arg0: i32) -> (i32, i32) {
    %c0_i32 = arith.constant 0 : i32
    %c0_i32_0 = arith.constant 0 : i32
    return %arg0, %c0_i32 : i32, i32
  }
  func.func @transform_1(%arg0: i32) -> (i32, i32) {
    %c0_i32 = arith.constant 0 : i32
    %c0_i32_0 = arith.constant 0 : i32
    %c0_i32_1 = arith.constant 0 : i32
    return %c0_i32, %c0_i32_0 : i32, i32
  }
  func.func @transform_2(%arg0: i32) -> (i32, i32, i32) {
    %c0_i32 = arith.constant 0 : i32
    %c0_i32_0 = arith.constant 0 : i32
    %c0_i32_1 = arith.constant 0 : i32
    %c0_i32_2 = arith.constant 0 : i32
    return %c0_i32, %c0_i32_0, %c0_i32_1 : i32, i32, i32
  }
  func.func @transform_3(%arg0: i32) -> (i32, i32) {
    %c0_i32 = arith.constant 0 : i32
    %c0_i32_0 = arith.constant 0 : i32
    %c0_i32_1 = arith.constant 0 : i32
    return %c0_i32, %c0_i32_0 : i32, i32
  }
  func.func @transform_4(%arg0: i32) -> (i32, i32) {
    %c0_i32 = arith.constant 0 : i32
    %c0_i32_0 = arith.constant 0 : i32
    return %arg0, %c0_i32 : i32, i32
  }
}

</mosaic_0001>

<bundles_post_ra>
// kernel: tpu_custom_call.1
= control target key start
LH: loop header
LB: loop body
LE: loop exit
PB: predicated region body
PF: predicated region fallthrough
CT: control target
= control target key end

     0   :  { %9 = vsyncpa [#allocation3], 0  ;;  %s730_s0 = inlined_call_operand.hbm [shape: f32[8,16], index: 0, kind: input, shape index: {}]   ;;  %s731_s1 = inlined_call_operand.hbm [shape: f32[16,128], index: 1, kind: input, shape index: {}]   ;;  %s732_s2 = inlined_call_operand.hbm [shape: f32[2,128,128], index: 2, kind: input, shape index: {}]   ;;  %s733_s3 = inlined_call_operand.vmem [shape: f32[3,128], index: 3, kind: input, shape index: {}]   ;;  %s734_s4 = inlined_call_operand.hbm [shape: f32[8,128], index: 4, kind: output, shape index: {}]  }
   0x1   :  { %10 = vsyncpa [#allocation6], 0 }
   0x2   :  { %11 = vsyncpa [#allocation4], 0  ;;  %s613_s15 = smov [#allocation5]   ;;  %s519_s19 = scalar_lea.hbm %s731_s1, 256 }
   0x3   :  { %s27_s16 = sshll.u32 %s613_s15, 4  ;;  %p520_p0 = scmp.ne.s32.totalorder %s731_s1, %s519_s19  ;;  %s28_s16 = int_to_ptr.vmem [resolvable:$true] %s27_s16 }
   0x4   :  { %p523_p1 = scmp.lt.u32.totalorder %s519_s19, %s731_s1 }
   0x6   :  { %p525_p2 = pnand %p523_p1, %p520_p0 }
   0x8   :  { %528 = shalt.err (!%p525_p2)
}
   0x9   :  { %s529_s24 = scalar_lea.vmem %s28_s16, 256  ;;  %p534_p4 = scmp.lt.s32.totalorder %s28_s16, %s28_s16 }
   0xa   :  { %p530_p3 = scmp.ne.s32.totalorder %s28_s16, %s529_s24  ;;  %p535_p5 = scmp.lt.s32.totalorder %s529_s24, %s529_s24 }
   0xc   :  { %p536_p6 = por %p535_p5, %p534_p4 }
   0xe   :  { %p537_p7 = pnand %p536_p6, %p530_p3 }
  0x10   :  { %540 = shalt.err (!%p537_p7)
}
  0x11   :  { %s614_s25 = smov 128   ;;  %s615_s26 = smov 8  }
  0x12   :  { %33 = dma.hbm_to_vmem [thread:$0]  %s731_s1, 256, %s28_s16, [#allocation6], %s614_s25, %s614_s25, %s615_s26  }
  0x13   :  { %s616_s29 = smov [#allocation2]   ;;  %s617_s5 = smov [#allocation7]  }
  0x14   :  { %s18_s30 = sshll.u32 %s616_s29, 4  ;;  %s39_s6 = sshll.u32 %s617_s5, 4  ;;  %s19_s30 = int_to_ptr.vmem [resolvable:$true] %s18_s30  ;;  %s40_s6 = int_to_ptr.vmem [resolvable:$true] %s39_s6 }
  0x15   :  { %s541_s9 = scalar_lea.hbm %s730_s0, 128 }
  0x16   :  { %p542_p8 = scmp.ne.s32.totalorder %s730_s0, %s541_s9  ;;  %p545_p9 = scmp.lt.u32.totalorder %s541_s9, %s730_s0 }
  0x18   :  { %p547_p10 = pnand %p545_p9, %p542_p8 }
  0x1a   :  { %550 = shalt.err (!%p547_p10)
}
  0x1b   :  { %s551_s1 = scalar_lea.vmem %s19_s30, 128  ;;  %p556_p12 = scmp.lt.s32.totalorder %s19_s30, %s19_s30 }
  0x1c   :  { %p552_p11 = scmp.ne.s32.totalorder %s19_s30, %s551_s1  ;;  %p557_p13 = scmp.lt.s32.totalorder %s551_s1, %s551_s1 }
  0x1e   :  { %p558_p0 = por %p557_p13, %p556_p12 }
  0x20   :  { %p559_p1 = pnand %p558_p0, %p552_p11 }
  0x22   :  { %562 = shalt.err (!%p559_p1)
}
  0x23   :  { %21 = dma.hbm_to_vmem [thread:$0]  %s730_s0, 128, %s19_s30, [#allocation3]  }
  0x24   :  { %s563_s18 = scalar_lea.hbm %s732_s2, 4096 }
  0x25   :  { %p564_p2 = scmp.ne.s32.totalorder %s732_s2, %s563_s18  ;;  %p567_p3 = scmp.lt.u32.totalorder %s563_s18, %s732_s2 }
  0x27   :  { %p569_p4 = pnand %p567_p3, %p564_p2 }
  0x29   :  { %572 = shalt.err (!%p569_p4)
}
  0x2a   :  { %s573_s23 = scalar_lea.vmem %s40_s6, 4096  ;;  %p578_p6 = scmp.lt.s32.totalorder %s40_s6, %s40_s6 }
  0x2b   :  { %p574_p5 = scmp.ne.s32.totalorder %s40_s6, %s573_s23  ;;  %p579_p7 = scmp.lt.s32.totalorder %s573_s23, %s573_s23 }
  0x2d   :  { %p580_p8 = por %p579_p7, %p578_p6 }
  0x2f   :  { %p581_p9 = pnand %p580_p8, %p574_p5 }
  0x31   :  { %584 = shalt.err (!%p581_p9)
}
  0x32   :  { %45 = dma.hbm_to_vmem [thread:$0]  %s732_s2, 4096, %s40_s6, [#allocation6], %s614_s25, %s614_s25, %s615_s26  }
  0x33   :  { %607 = dma.done.wait [#allocation3], 128  }
  0x34   :  { %608 = vsyncadd [#allocation3], 4294967168 }
  0x35   :  { %609 = dma.done.wait [#allocation6], 4352  }
  0x36   :  { %610 = vsyncadd [#allocation6], 4294962944  ;;  %v618_v0 = vmov 0.0|0.0   ;;  %vm619_vm0 = vmmov 0   ;;  %v620_v1 = vmov 0.0   ;;  %v58_v2 = vld [vmem:[#allocation5] sm:$0xff] }
  0x37   :  { %459 = vmatprep.subr.bf16.mxu0 %v618_v0  ;;  %386 = vmatprep.mubr.msk.f32.mxu0 %vm619_vm0, %v620_v1  ;;  %v59_v3 = vld [vmem:[#allocation5 + $0x8] sm:$0xff]  ;;  %v140_v5 = vld [vmem:[#allocation7] sm:$0xff]  ;;  %v141_v6 = vld [vmem:[#allocation7 + $0x8] sm:$0xff]  ;;  %vm65_vm1 = vcmask 130048   ;;  %s621_s30 = smov [#allocation8]  }
  0x38   :  { %462 = vmatprep.subr.bf16.mxu1 %v618_v0  ;;  %421 = vmatprep.mubr.msk.f32.mxu1 %vm619_vm0, %v620_v1  ;;  %v460_v4 = vpack.c.bf16 %v59_v3, %v58_v2  ;;  %v142_v7 = vld [vmem:[#allocation7 + $0x10] sm:$0xff]  ;;  %v463_v8 = vpack.c.bf16 %v141_v6, %v140_v5  ;;  %v143_v9 = vld [vmem:[#allocation7 + $0x18] sm:$0xff]  ;;  %v57_v10 = vld [vmem:[#allocation2] sm:$0xff]  ;;  %s331_s5 = sshll.u32 %s621_s30, 4  ;;  %s332_s5 = int_to_ptr.vmem [resolvable:$true] %s331_s5 }
  0x39   :  { %v466_v11 = vpack.c.bf16 %v143_v9, %v142_v7  ;;  %v144_v12 = vld [vmem:[#allocation7 + $0x20] sm:$0xff]  ;;  %v145_v13 = vld [vmem:[#allocation7 + $0x28] sm:$0xff]  ;;  %v146_v15 = vld [vmem:[#allocation7 + $0x30] sm:$0xff]  ;;  %s585_s6 = scalar_lea.vmem %s332_s5, 128  ;;  %p590_p11 = scmp.lt.s32.totalorder %s332_s5, %s332_s5 }
  0x3a   :  { %461 = vmatpush3.bf16.msra.mxu0 %v460_v4  ;;  %464 = vmatpush3.bf16.msra.mxu1 %v463_v8  ;;  %v469_v14 = vpack.c.bf16 %v145_v13, %v144_v12  ;;  %v147_v16 = vld [vmem:[#allocation7 + $0x38] sm:$0xff]  ;;  %v148_v18 = vld [vmem:[#allocation7 + $0x40] sm:$0xff]  ;;  %v149_v19 = vld [vmem:[#allocation7 + $0x48] sm:$0xff]  ;;  %p586_p10 = scmp.ne.s32.totalorder %s332_s5, %s585_s6  ;;  %p591_p12 = scmp.lt.s32.totalorder %s585_s6, %s585_s6 }
  0x3b   :  { %486 = vmatprep.subr.bf16.mxu0 %v618_v0  ;;  %465 = vmatprep.subr.bf16.mxu1 %v618_v0  ;;  %v472_v17 = vpack.c.bf16 %v147_v16, %v146_v15  ;;  %v475_v20 = vpack.c.bf16 %v149_v19, %v148_v18  ;;  %v150_v21 = vld [vmem:[#allocation7 + $0x50] sm:$0xff]  ;;  %v151_v22 = vld [vmem:[#allocation7 + $0x58] sm:$0xff]  ;;  %v152_v24 = vld [vmem:[#allocation7 + $0x60] sm:$0xff] }
  0x3c   :  { %v478_v23 = vpack.c.bf16 %v151_v22, %v150_v21  ;;  %v153_v25 = vld [vmem:[#allocation7 + $0x68] sm:$0xff]  ;;  %v154_v27 = vld [vmem:[#allocation7 + $0x70] sm:$0xff]  ;;  %v155_v28 = vld [vmem:[#allocation7 + $0x78] sm:$0xff]  ;;  %p592_p13 = por %p591_p12, %p590_p11 }
  0x3d   :  { %387 = vmatmul.mubr.msk.f32.vlgmr.msra.gmra.mrb[0].mxu0 %vm65_vm1, %v57_v10  ;;  %v481_v26 = vpack.c.bf16 %v153_v25, %v152_v24  ;;  %v484_v29 = vpack.c.bf16 %v155_v28, %v154_v27  ;;  %v233_v30 = vld [vmem:[#allocation7 + $0x80] sm:$0xff]  ;;  %v234_v31 = vld [vmem:[#allocation7 + $0x88] sm:$0xff]  ;;  %v235_v32 = vld [vmem:[#allocation7 + $0x90] sm:$0xff] }
  0x3e   :  { %456 = vmatprep.mubr.msk.f32.mxu0 %vm619_vm0, %v620_v1  ;;  %467 = vmatpush3.bf16.msra.mxu1 %v466_v11  ;;  %v487_v33 = vpack.c.bf16 %v234_v31, %v233_v30  ;;  %v236_v34 = vld [vmem:[#allocation7 + $0x98] sm:$0xff]  ;;  %v237_v36 = vld [vmem:[#allocation7 + $0xa0] sm:$0xff]  ;;  %v238_v37 = vld [vmem:[#allocation7 + $0xa8] sm:$0xff]  ;;  %p593_p0 = pnand %p592_p13, %p586_p10 }
  0x3f   :  { %468 = vmatprep.subr.bf16.mxu1 %v618_v0  ;;  %v490_v35 = vpack.c.bf16 %v236_v34, %v235_v32  ;;  %v493_v38 = vpack.c.bf16 %v238_v37, %v237_v36  ;;  %v239_v39 = vld [vmem:[#allocation7 + $0xb0] sm:$0xff]  ;;  %v240_v40 = vld [vmem:[#allocation7 + $0xb8] sm:$0xff]  ;;  %v241_v42 = vld [vmem:[#allocation7 + $0xc0] sm:$0xff] }
  0x40   :  { %488 = vmatpush3.bf16.msra.mxu0 %v487_v33  ;;  %v496_v41 = vpack.c.bf16 %v240_v40, %v239_v39  ;;  %v242_v43 = vld [vmem:[#allocation7 + $0xc8] sm:$0xff]  ;;  %v243_v45 = vld [vmem:[#allocation7 + $0xd0] sm:$0xff]  ;;  %v244_v46 = vld [vmem:[#allocation7 + $0xd8] sm:$0xff] }
  0x41   :  { %489 = vmatprep.subr.bf16.mxu0 %v618_v0  ;;  %v499_v44 = vpack.c.bf16 %v242_v43, %v241_v42  ;;  %v502_v47 = vpack.c.bf16 %v244_v46, %v243_v45  ;;  %v245_v48 = vld [vmem:[#allocation7 + $0xe0] sm:$0xff]  ;;  %v246_v49 = vld [vmem:[#allocation7 + $0xe8] sm:$0xff]  ;;  %v247_v56 = vld [vmem:[#allocation7 + $0xf0] sm:$0xff] }
  0x42   :  { %470 = vmatpush3.bf16.msra.mxu1 %v469_v14  ;;  %v505_v50 = vpack.c.bf16 %v246_v49, %v245_v48  ;;  %v341_v51 = vld [vmem:[%s733_s3] ss:$0 sm:$0xff]  ;;  %v248_v57 = vld [vmem:[#allocation7 + $0xf8] sm:$0xff]  ;;  %v343_v59 = vld [vmem:[%s733_s3 + $0x1] ss:$0 sm:$0xff] }
  0x43   :  { %471 = vmatprep.subr.bf16.mxu1 %v618_v0  ;;  %v508_v58 = vpack.c.bf16 %v248_v57, %v247_v56 }
  0x44   :  { %491 = vmatpush3.bf16.msra.mxu0 %v490_v35 }
  0x45   :  { %492 = vmatprep.subr.bf16.mxu0 %v618_v0 }
  0x46   :  { %473 = vmatpush3.bf16.msra.mxu1 %v472_v17 }
  0x47   :  { %474 = vmatprep.subr.bf16.mxu1 %v618_v0 }
  0x48   :  { %494 = vmatpush3.bf16.msra.mxu0 %v493_v38 }
  0x49   :  { %495 = vmatprep.subr.bf16.mxu0 %v618_v0 }
  0x4a   :  { %476 = vmatpush3.bf16.msra.mxu1 %v475_v20 }
  0x4b   :  { %477 = vmatprep.subr.bf16.mxu1 %v618_v0 }
  0x4c   :  { %497 = vmatpush3.bf16.msra.mxu0 %v496_v41 }
  0x4d   :  { %498 = vmatprep.subr.bf16.mxu0 %v618_v0 }
  0x4e   :  { %479 = vmatpush3.bf16.msra.mxu1 %v478_v23 }
  0x4f   :  { %480 = vmatprep.subr.bf16.mxu1 %v618_v0 }
  0x50   :  { %500 = vmatpush3.bf16.msra.mxu0 %v499_v44 }
  0x51   :  { %501 = vmatprep.subr.bf16.mxu0 %v618_v0 }
  0x52   :  { %482 = vmatpush3.bf16.msra.mxu1 %v481_v26 }
  0x53   :  { %483 = vmatprep.subr.bf16.mxu1 %v618_v0 }
  0x54   :  { %503 = vmatpush3.bf16.msra.mxu0 %v502_v47 }
  0x55   :  { %504 = vmatprep.subr.bf16.mxu0 %v618_v0 }
  0x56   :  { %485 = vmatpush3.bf16.msra.mxu1 %v484_v29 }
  0x58   :  { %506 = vmatpush3.bf16.msra.mxu0 %v505_v50 }
  0x59   :  { %507 = vmatprep.subr.bf16.mxu0 %v618_v0  ;;  %v344_v0 = vld [vmem:[%s733_s3 + $0x2] ss:$0 sm:$0xff] }
  0x5c   :  { %509 = vmatpush3.bf16.msra.mxu0 %v508_v58 }
 0x110   :  { %v135_v52 = vpop.f32.mrb[0].mxu0 }
 0x111   :  { %v136_v53 = vadd.f32 %v341_v51, %v135_v52  ;;  %v388_v54 = vpop.f32.mrb[1].mxu0 }
 0x113   :  { %v139_v55 = vmax.f32 %v136_v53, 0.0 }
 0x115   :  { %422 = vmatmul.mubr.f32.vlgmr.msra.gmra.mrb[0].mxu1 %v139_v55 }
 0x1e8   :  { %v227_v60 = vpop.f32.mrb[0].mxu1 }
 0x1e9   :  { %v228_v61 = vadd.f32 %v343_v59, %v227_v60  ;;  %v423_v62 = vpop.f32.mrb[1].mxu1 }
 0x1eb   :  { %v231_v63 = vmax.f32 %v228_v61, 0.0 }
 0x1ed   :  { %457 = vmatmul.mubr.f32.vlgmr.msra.gmra.mrb[2].mxu0 %v231_v63 }
 0x2c0   :  { %v320_v1 = vpop.f32.mrb[2].mxu0 }
 0x2c1   :  { %v321_v2 = vadd.f32 %v344_v0, %v320_v1  ;;  %v458_v3 = vpop.f32.mrb[3].mxu0 }
 0x2c3   :  { %324 = vst [vmem:[#allocation8] sm:$0xff] %v321_v2 }
 0x2c4   :  { %596 = shalt.err (!%p593_p0)
}
 0x2c5   :  { %s597_s9 = scalar_lea.hbm %s734_s4, 128 }
 0x2c6   :  { %p598_p1 = scmp.ne.s32.totalorder %s734_s4, %s597_s9  ;;  %p601_p2 = scmp.lt.u32.totalorder %s597_s9, %s734_s4 }
 0x2c8   :  { %p603_p3 = pnand %p601_p2, %p598_p1 }
 0x2ca   :  { %606 = shalt.err (!%p603_p3)
}
 0x2cb   :  { %334 = dma.vmem_to_hbm [thread:$0]  %s332_s5, 128, %s734_s4, [#allocation4]  }
 0x2cc   :  { %611 = dma.done.wait [#allocation4], 128  }
 0x2cd   :  { %612 = vsyncadd [#allocation4], 4294967168 }
 0x2ce   :  { %338 = vsyncpa [#allocation3], 1 }
 0x2cf   :  { %339 = vsyncpa [#allocation6], 1 }
 0x2d0   :  { %340 = vsyncpa [#allocation4], 1 }

</bundles_post_ra>
